<compile_context>
chip_gen: v5e
topology: v5e:2x2
jax: 0.10.0
libtpu: 0.0.40
codegen_flags: <defaults>
</compile_context>

<pallas_src>
import math

import jax
import jax.numpy as jnp
from jax.experimental import pallas as pl
from jax.experimental.pallas import tpu as pltpu

_LANE = 128
_SUBLANE = 8


def _round_up(n, m):
    return ((n + m - 1) // m) * m


def _make_mlp_kernel(num_relu_layers, use_vpu_reduce, range_min, range_max):
    """Build the fused MLP kernel body.

    Ref layout (per grid step):
      refs[0]                      : x tile           [TILE_B, in_pad]
      refs[1 + 2*l], refs[2 + 2*l] : (W, b) of ReLU layer l, l in [0, num_relu_layers)
      refs[-3], refs[-2]           : output-layer (W, b)
      refs[-1]                     : output tile      [TILE_B, out_pad]
    """

    def kernel(*refs):
        x_ref = refs[0]
        o_ref = refs[-1]
        w_out_ref, b_out_ref = refs[-3], refs[-2]

        h = x_ref[...]  # already f32; no redundant cast
        for l in range(num_relu_layers):
            w_ref = refs[1 + 2 * l]
            b_ref = refs[2 + 2 * l]
            h = jnp.dot(h, w_ref[...], preferred_element_type=jnp.float32) + b_ref[...]
            h = jnp.maximum(h, 0.0)

        if use_vpu_reduce:
            # out_dim == 1: an N=1 matmul would use a single MXU output lane and
            # pay a full push/pop drain.  Do it on the VPU + a cross-lane (XLU)
            # reduce instead.  The broadcast-add with b ([1, out_pad]) makes the
            # result lane-dense so the store is an unmasked vst; only lane 0 is
            # consumed by the wrapper.
            y = jnp.sum(h * w_out_ref[...], axis=-1, keepdims=True) + b_out_ref[...]
        else:
            y = jnp.dot(h, w_out_ref[...], preferred_element_type=jnp.float32) + b_out_ref[...]

        if range_min is not None:
            y = jax.nn.sigmoid(y) * (range_max - range_min) + range_min

        o_ref[...] = y.astype(o_ref.dtype)

    return kernel


def fc_continuous_net_forward(x, params, range_=None, tile_b=512):
    """Fused FCContinuousNet forward pass.

    x:      [B, input_dim] float32
    params: list of (W, b), W [in_features, out_features], b [out_features]
            (transposed vs. PyTorch nn.Linear).  len(params) == layer_num + 2.
    range_: optional {"min": float, "max": float} for sigmoid range scaling.
    """
    B, input_dim = x.shape
    out_dim = params[-1][0].shape[1]
    num_relu_layers = len(params) - 1
    use_vpu_reduce = out_dim == 1

    range_min = None if range_ is None else float(range_["min"])
    range_max = None if range_ is None else float(range_["max"])

    in_pad = _round_up(input_dim, _LANE)
    out_pad = _round_up(out_dim, _LANE)

    # Zero-pad every feature dim to a lane (128) multiple; numerically exact
    # for a ReLU MLP (padded inputs/activations are 0 and hit zero weights).
    padded_params = []
    prev_pad = in_pad
    for idx, (w, b) in enumerate(params):
        fin, fout = w.shape
        is_last = idx == len(params) - 1
        fout_pad = out_pad if is_last else _round_up(fout, _LANE)
        if is_last and use_vpu_reduce:
            # Store the N=1 output weight as a [1, emb_pad] row vector for the
            # VPU-reduce path.
            w_p = jnp.zeros((1, prev_pad), jnp.float32).at[0, :fin].set(
                w[:, 0].astype(jnp.float32))
        else:
            w_p = jnp.zeros((prev_pad, fout_pad), jnp.float32).at[:fin, :fout].set(
                w.astype(jnp.float32))
        b_p = jnp.zeros((1, fout_pad), jnp.float32).at[0, :fout].set(
            b.astype(jnp.float32))
        padded_params.extend([w_p, b_p])
        prev_pad = fout_pad

    # Batch tiling: rows on sublanes; the grid pipelines x/out DMA and lets
    # v7x shard tiles across its two TensorCores.
    b_tile = min(tile_b, _round_up(B, _SUBLANE))
    b_pad = _round_up(B, b_tile)
    x_p = jnp.zeros((b_pad, in_pad), jnp.float32).at[:B, :input_dim].set(
        x.astype(jnp.float32))

    grid = (b_pad // b_tile,)

    kernel = _make_mlp_kernel(num_relu_layers, use_vpu_reduce, range_min, range_max)

    def const_spec(arr):
        # Full-array block, same block every step -> weights stay VMEM-resident.
        return pl.BlockSpec(arr.shape, lambda i: (0, 0))

    out = pl.pallas_call(
        kernel,
        out_shape=jax.ShapeDtypeStruct((b_pad, out_pad), jnp.float32),
        grid=grid,
        in_specs=[pl.BlockSpec((b_tile, in_pad), lambda i: (i, 0))]
                 + [const_spec(p) for p in padded_params],
        out_specs=pl.BlockSpec((b_tile, out_pad), lambda i: (i, 0)),
        compiler_params=pltpu.CompilerParams(
            dimension_semantics=("parallel",)),
    )(x_p, *padded_params)

    out = out[:B, :out_dim]
    # PyTorch: if x.shape[1] == 1: x = x.squeeze(1)
    if out_dim == 1:
        out = jnp.squeeze(out, axis=1)
    return out


def init_params(key, input_dim, embedding_dim, output_dim, layer_num=1):
    """nn.Linear-style init (uniform +-1/sqrt(fan_in)); W stored [in, out]."""
    dims = [input_dim] + [embedding_dim] * (layer_num + 1) + [output_dim]
    keys = jax.random.split(key, 2 * (len(dims) - 1))
    params = []
    for i in range(len(dims) - 1):
        fan_in, fan_out = dims[i], dims[i + 1]
        bound = 1.0 / math.sqrt(fan_in)
        w = jax.random.uniform(keys[2 * i], (fan_in, fan_out), jnp.float32,
                               -bound, bound)
        b = jax.random.uniform(keys[2 * i + 1], (fan_out,), jnp.float32,
                               -bound, bound)
        params.append((w, b))
    return params


def reference_forward(x, params, range_=None):
    """Pure-JAX reference for correctness check."""
    h = x
    for w, b in params[:-1]:
        h = jnp.maximum(h @ w + b, 0.0)
    w, b = params[-1]
    y = h @ w + b
    if range_ is not None:
        y = jax.nn.sigmoid(y) * (range_["max"] - range_["min"]) + range_["min"]
    if y.shape[1] == 1:
        y = jnp.squeeze(y, axis=1)
    return y


if __name__ == "__main__":
    # Shapes consistent with the module: batch=8, input_dim=16,
    # embedding_dim=32, output_dim=1, layer_num=1, with a {min,max} range.
    B, INPUT_DIM, EMB_DIM, OUT_DIM, LAYER_NUM = 8, 16, 32, 1, 1
    RANGE = {"min": -2.0, "max": 2.0}

    key = jax.random.PRNGKey(0)
    key_x, key_p, key_p2 = jax.random.split(key, 3)

    x = jax.random.normal(key_x, (B, INPUT_DIM), jnp.float32)
    params = init_params(key_p, INPUT_DIM, EMB_DIM, OUT_DIM, LAYER_NUM)

    y = jax.block_until_ready(fc_continuous_net_forward(x, params, RANGE))
    y_ref = reference_forward(x, params, RANGE)
    assert y.shape == (B,), f"unexpected output shape {y.shape}"
    assert jnp.allclose(y, y_ref, atol=1e-5, rtol=1e-5), "mismatch (out_dim=1)"

    # Also exercise the MXU output path (out_dim > 1, no range scaling).
    params2 = init_params(key_p2, INPUT_DIM, EMB_DIM, 3, LAYER_NUM)
    y2 = jax.block_until_ready(fc_continuous_net_forward(x, params2, None))
    y2_ref = reference_forward(x, params2, None)
    assert y2.shape == (B, 3), f"unexpected output shape {y2.shape}"
    assert jnp.allclose(y2, y2_ref, atol=1e-5, rtol=1e-5), "mismatch (out_dim=3)"

    print("KERNEL_OK")
</pallas_src>

<mosaic_0001>
module attributes {stable_mosaic.version = 11 : i64} {
  func.func @kernel(%arg0: i32, %arg1: memref<8x128xf32, #tpu.memory_space<vmem>>, %arg2: memref<128x128xf32, #tpu.memory_space<vmem>>, %arg3: memref<1x128xf32, #tpu.memory_space<vmem>>, %arg4: memref<128x128xf32, #tpu.memory_space<vmem>>, %arg5: memref<1x128xf32, #tpu.memory_space<vmem>>, %arg6: memref<1x128xf32, #tpu.memory_space<vmem>>, %arg7: memref<1x128xf32, #tpu.memory_space<vmem>>, %arg8: memref<8x128xf32, #tpu.memory_space<vmem>>) attributes {dimension_semantics = [#tpu.dimension_semantics<parallel>], iteration_bounds = array<i64: 1>, scalar_prefetch = 0 : i64, scratch_operands = 0 : i64, tpu.core_type = #tpu.core_type<tc>, window_params = [{transform_indices = @transform_0, window_bounds = array<i64: 8, 128>}, {pipeline_mode = #tpu.pipeline_mode<synchronous>, transform_indices = @transform_1, window_bounds = array<i64: 128, 128>}, {pipeline_mode = #tpu.pipeline_mode<synchronous>, transform_indices = @transform_2, window_bounds = array<i64: 1, 128>}, {pipeline_mode = #tpu.pipeline_mode<synchronous>, transform_indices = @transform_3, window_bounds = array<i64: 128, 128>}, {pipeline_mode = #tpu.pipeline_mode<synchronous>, transform_indices = @transform_4, window_bounds = array<i64: 1, 128>}, {pipeline_mode = #tpu.pipeline_mode<synchronous>, transform_indices = @transform_5, window_bounds = array<i64: 1, 128>}, {pipeline_mode = #tpu.pipeline_mode<synchronous>, transform_indices = @transform_6, window_bounds = array<i64: 1, 128>}, {transform_indices = @transform_7, window_bounds = array<i64: 8, 128>}]} {
    %c0 = arith.constant 0 : index
    %c0_0 = arith.constant 0 : index
    %0 = vector.load %arg1[%c0, %c0_0] : memref<8x128xf32, #tpu.memory_space<vmem>>, vector<8x128xf32>
    %c0_1 = arith.constant 0 : index
    %c0_2 = arith.constant 0 : index
    %1 = vector.load %arg2[%c0_1, %c0_2] : memref<128x128xf32, #tpu.memory_space<vmem>>, vector<128x128xf32>
    %cst = arith.constant dense<0.000000e+00> : vector<8x128xf32>
    %2 = tpu.matmul %0, %1, %cst {dimension_numbers = #tpu.dot_dimension_numbers<[1], [0], [0], [1], [0, 0, 1, 1], [], []>} : vector<8x128xf32>, vector<128x128xf32>, vector<8x128xf32> -> vector<8x128xf32>
    %c0_3 = arith.constant 0 : index
    %c0_4 = arith.constant 0 : index
    %3 = vector.load %arg3[%c0_3, %c0_4] : memref<1x128xf32, #tpu.memory_space<vmem>>, vector<1x128xf32>
    %4 = vector.broadcast %3 : vector<1x128xf32> to vector<8x128xf32>
    %5 = arith.addf %2, %4 : vector<8x128xf32>
    %cst_5 = arith.constant 0.000000e+00 : f32
    %6 = vector.broadcast %cst_5 : f32 to vector<8x128xf32>
    %7 = arith.maximumf %5, %6 : vector<8x128xf32>
    %c0_6 = arith.constant 0 : index
    %c0_7 = arith.constant 0 : index
    %8 = vector.load %arg4[%c0_6, %c0_7] : memref<128x128xf32, #tpu.memory_space<vmem>>, vector<128x128xf32>
    %cst_8 = arith.constant dense<0.000000e+00> : vector<8x128xf32>
    %9 = tpu.matmul %7, %8, %cst_8 {dimension_numbers = #tpu.dot_dimension_numbers<[1], [0], [0], [1], [0, 0, 1, 1], [], []>} : vector<8x128xf32>, vector<128x128xf32>, vector<8x128xf32> -> vector<8x128xf32>
    %c0_9 = arith.constant 0 : index
    %c0_10 = arith.constant 0 : index
    %10 = vector.load %arg5[%c0_9, %c0_10] : memref<1x128xf32, #tpu.memory_space<vmem>>, vector<1x128xf32>
    %11 = vector.broadcast %10 : vector<1x128xf32> to vector<8x128xf32>
    %12 = arith.addf %9, %11 : vector<8x128xf32>
    %cst_11 = arith.constant 0.000000e+00 : f32
    %13 = vector.broadcast %cst_11 : f32 to vector<8x128xf32>
    %14 = arith.maximumf %12, %13 : vector<8x128xf32>
    %c0_12 = arith.constant 0 : index
    %c0_13 = arith.constant 0 : index
    %15 = vector.load %arg6[%c0_12, %c0_13] : memref<1x128xf32, #tpu.memory_space<vmem>>, vector<1x128xf32>
    %16 = vector.broadcast %15 : vector<1x128xf32> to vector<8x128xf32>
    %17 = arith.mulf %14, %16 : vector<8x128xf32>
    %cst_14 = arith.constant dense<0.000000e+00> : vector<8xf32>
    %18 = vector.multi_reduction <add>, %17, %cst_14 [1] : vector<8x128xf32> to vector<8xf32>
    %19 = vector.shape_cast %18 : vector<8xf32> to vector<8x1xf32>
    %c0_15 = arith.constant 0 : index
    %c0_16 = arith.constant 0 : index
    %20 = vector.load %arg7[%c0_15, %c0_16] : memref<1x128xf32, #tpu.memory_space<vmem>>, vector<1x128xf32>
    %21 = vector.broadcast %19 : vector<8x1xf32> to vector<8x128xf32>
    %22 = vector.broadcast %20 : vector<1x128xf32> to vector<8x128xf32>
    %23 = arith.addf %21, %22 : vector<8x128xf32>
    %24 = arith.negf %23 : vector<8x128xf32>
    %25 = math.exp %24 : vector<8x128xf32>
    %cst_17 = arith.constant 1.000000e+00 : f32
    %26 = vector.broadcast %cst_17 : f32 to vector<8x128xf32>
    %27 = arith.addf %26, %25 : vector<8x128xf32>
    %28 = arith.divf %26, %27 : vector<8x128xf32>
    %cst_18 = arith.constant 4.000000e+00 : f32
    %29 = vector.broadcast %cst_18 : f32 to vector<8x128xf32>
    %30 = arith.mulf %28, %29 : vector<8x128xf32>
    %cst_19 = arith.constant -2.000000e+00 : f32
    %31 = vector.broadcast %cst_19 : f32 to vector<8x128xf32>
    %32 = arith.addf %30, %31 : vector<8x128xf32>
    %c0_20 = arith.constant 0 : index
    %c0_21 = arith.constant 0 : index
    %33 = vector.load %arg8[%c0_20, %c0_21] : memref<8x128xf32, #tpu.memory_space<vmem>>, vector<8x128xf32>
    tpu.vector_store %arg8[%c0_20, %c0_21], %32 {strides = array<i32>} : memref<8x128xf32, #tpu.memory_space<vmem>>, vector<8x128xf32>,
    return
  }
  func.func @transform_0(%arg0: i32) -> (i32, i32) {
    %c0_i32 = arith.constant 0 : i32
    %c0_i32_0 = arith.constant 0 : i32
    return %arg0, %c0_i32 : i32, i32
  }
  func.func @transform_1(%arg0: i32) -> (i32, i32) {
    %c0_i32 = arith.constant 0 : i32
    %c0_i32_0 = arith.constant 0 : i32
    %c0_i32_1 = arith.constant 0 : i32
    return %c0_i32, %c0_i32_0 : i32, i32
  }
  func.func @transform_2(%arg0: i32) -> (i32, i32) {
    %c0_i32 = arith.constant 0 : i32
    %c0_i32_0 = arith.constant 0 : i32
    %c0_i32_1 = arith.constant 0 : i32
    return %c0_i32, %c0_i32_0 : i32, i32
  }
  func.func @transform_3(%arg0: i32) -> (i32, i32) {
    %c0_i32 = arith.constant 0 : i32
    %c0_i32_0 = arith.constant 0 : i32
    %c0_i32_1 = arith.constant 0 : i32
    return %c0_i32, %c0_i32_0 : i32, i32
  }
  func.func @transform_4(%arg0: i32) -> (i32, i32) {
    %c0_i32 = arith.constant 0 : i32
    %c0_i32_0 = arith.constant 0 : i32
    %c0_i32_1 = arith.constant 0 : i32
    return %c0_i32, %c0_i32_0 : i32, i32
  }
  func.func @transform_5(%arg0: i32) -> (i32, i32) {
    %c0_i32 = arith.constant 0 : i32
    %c0_i32_0 = arith.constant 0 : i32
    %c0_i32_1 = arith.constant 0 : i32
    return %c0_i32, %c0_i32_0 : i32, i32
  }
  func.func @transform_6(%arg0: i32) -> (i32, i32) {
    %c0_i32 = arith.constant 0 : i32
    %c0_i32_0 = arith.constant 0 : i32
    %c0_i32_1 = arith.constant 0 : i32
    return %c0_i32, %c0_i32_0 : i32, i32
  }
  func.func @transform_7(%arg0: i32) -> (i32, i32) {
    %c0_i32 = arith.constant 0 : i32
    %c0_i32_0 = arith.constant 0 : i32
    return %arg0, %c0_i32 : i32, i32
  }
}

</mosaic_0001>

<bundles_post_ra>
// kernel: tpu_custom_call.1
= control target key start
LH: loop header
LB: loop body
LE: loop exit
PB: predicated region body
PF: predicated region fallthrough
CT: control target
= control target key end

     0   :  { %12 = vsyncpa [#allocation3], 0  ;;  %s394_s0 = inlined_call_operand.hbm [shape: f32[8,128], index: 0, kind: input, shape index: {}]   ;;  %s395_s1 = inlined_call_operand.hbm [shape: f32[128,128], index: 1, kind: input, shape index: {}]   ;;  %s396_s2 = inlined_call_operand.vmem [shape: f32[1,128], index: 2, kind: input, shape index: {}]   ;;  %s397_s3 = inlined_call_operand.hbm [shape: f32[128,128], index: 3, kind: input, shape index: {}]   ;;  %s398_s4 = inlined_call_operand.vmem [shape: f32[1,128], index: 4, kind: input, shape index: {}]   ;;  %s399_s5 = inlined_call_operand.vmem [shape: f32[1,128], index: 5, kind: input, shape index: {}]   ;;  %s400_s6 = inlined_call_operand.vmem [shape: f32[1,128], index: 6, kind: input, shape index: {}]   ;;  %s401_s7 = inlined_call_operand.hbm [shape: f32[8,128], index: 7, kind: output, shape index: {}]  }
   0x1   :  { %13 = vsyncpa [#allocation6], 0  ;;  %s30_s26 = sshll.u32 %s395_s1, 4  ;;  %s31_s26 = int_to_ptr.hbm [resolvable:$true] %s30_s26 }
   0x2   :  { %14 = vsyncpa [#allocation4], 0  ;;  %s324_s27 = smov [#allocation5]   ;;  %s20_s8 = sshll.u32 %s394_s0, 4  ;;  %s21_s8 = int_to_ptr.hbm [resolvable:$true] %s20_s8 }
   0x3   :  { %s32_s28 = sshll.u32 %s324_s27, 4  ;;  %s325_s9 = smov 128   ;;  %s33_s28 = int_to_ptr.vmem [resolvable:$true] %s32_s28 }
   0x4   :  { %s326_s10 = smov 8   ;;  %s327_s11 = smov [#allocation2]  }
   0x5   :  { %38 = dma.hbm_to_vmem [thread:$0]  %s31_s26, 2048, %s33_s28, [#allocation6], %s325_s9, %s325_s9, %s326_s10  }
   0x6   :  { %s22_s12 = sshll.u32 %s327_s11, 4  ;;  %s45_s15 = sshll.u32 %s397_s3, 4  ;;  %s23_s12 = int_to_ptr.vmem [resolvable:$true] %s22_s12  ;;  %s46_s15 = int_to_ptr.hbm [resolvable:$true] %s45_s15 }
   0x7   :  { %25 = dma.hbm_to_vmem [thread:$0]  %s21_s8, 128, %s23_s12, [#allocation3]  }
   0x8   :  { %s328_s1 = smov [#allocation7]  }
   0x9   :  { %s47_s16 = sshll.u32 %s328_s1, 4  ;;  %s48_s16 = int_to_ptr.vmem [resolvable:$true] %s47_s16 }
   0xa   :  { %53 = dma.hbm_to_vmem [thread:$0]  %s46_s15, 2048, %s48_s16, [#allocation6], %s325_s9, %s325_s9, %s326_s10  }
   0xb   :  { %318 = dma.done.wait [#allocation3], 128  }
   0xc   :  { %319 = vsyncadd [#allocation3], 4294967168 }
   0xd   :  { %320 = dma.done.wait [#allocation6], 4096  }
   0xe   :  { %321 = vsyncadd [#allocation6], 4294963200  ;;  %v88_v0 = vld [vmem:[#allocation5 + $0x78] sm:$0xff]  ;;  %v87_v1 = vld [vmem:[#allocation5 + $0x70] sm:$0xff]  ;;  %s196_s23 = sshll.u32 %s401_s7, 4  ;;  %s197_s23 = int_to_ptr.hbm [resolvable:$true] %s196_s23 }
   0xf   :  { %93 = vmatpush.msra.mxu0 %v88_v0  ;;  %v86_v2 = vld [vmem:[#allocation5 + $0x68] sm:$0xff]  ;;  %v85_v3 = vld [vmem:[#allocation5 + $0x60] sm:$0xff]  ;;  %v129_v4 = vld [vmem:[#allocation7 + $0x78] sm:$0xff] }
  0x10   :  { %v84_v5 = vld [vmem:[#allocation5 + $0x58] sm:$0xff]  ;;  %134 = vmatpush.msra.mxu1 %v129_v4  ;;  %v128_v6 = vld [vmem:[#allocation7 + $0x70] sm:$0xff]  ;;  %v127_v7 = vld [vmem:[#allocation7 + $0x68] sm:$0xff] }
  0x11   :  { %94 = vmatpush.msra.mxu0 %v87_v1  ;;  %v83_v8 = vld [vmem:[#allocation5 + $0x50] sm:$0xff]  ;;  %v126_v9 = vld [vmem:[#allocation7 + $0x60] sm:$0xff]  ;;  %v82_v10 = vld [vmem:[#allocation5 + $0x48] sm:$0xff] }
  0x12   :  { %135 = vmatpush.msra.mxu1 %v128_v6  ;;  %v125_v11 = vld [vmem:[#allocation7 + $0x58] sm:$0xff]  ;;  %v81_v12 = vld [vmem:[#allocation5 + $0x40] sm:$0xff]  ;;  %v124_v13 = vld [vmem:[#allocation7 + $0x50] sm:$0xff] }
  0x13   :  { %95 = vmatpush.msra.mxu0 %v86_v2  ;;  %v80_v14 = vld [vmem:[#allocation5 + $0x38] sm:$0xff]  ;;  %v123_v15 = vld [vmem:[#allocation7 + $0x48] sm:$0xff]  ;;  %v79_v16 = vld [vmem:[#allocation5 + $0x30] sm:$0xff] }
  0x14   :  { %136 = vmatpush.msra.mxu1 %v127_v7  ;;  %v122_v17 = vld [vmem:[#allocation7 + $0x40] sm:$0xff]  ;;  %v78_v18 = vld [vmem:[#allocation5 + $0x28] sm:$0xff]  ;;  %v121_v19 = vld [vmem:[#allocation7 + $0x38] sm:$0xff] }
  0x15   :  { %96 = vmatpush.msra.mxu0 %v85_v3  ;;  %v77_v20 = vld [vmem:[#allocation5 + $0x20] sm:$0xff]  ;;  %v120_v21 = vld [vmem:[#allocation7 + $0x30] sm:$0xff]  ;;  %v76_v22 = vld [vmem:[#allocation5 + $0x18] sm:$0xff] }
  0x16   :  { %137 = vmatpush.msra.mxu1 %v126_v9  ;;  %v119_v23 = vld [vmem:[#allocation7 + $0x28] sm:$0xff]  ;;  %v75_v24 = vld [vmem:[#allocation5 + $0x10] sm:$0xff]  ;;  %v118_v25 = vld [vmem:[#allocation7 + $0x20] sm:$0xff] }
  0x17   :  { %97 = vmatpush.msra.mxu0 %v84_v5  ;;  %v74_v26 = vld [vmem:[#allocation5 + $0x8] sm:$0xff]  ;;  %v117_v27 = vld [vmem:[#allocation7 + $0x18] sm:$0xff]  ;;  %v73_v28 = vld [vmem:[#allocation5] sm:$0xff] }
  0x18   :  { %138 = vmatpush.msra.mxu1 %v125_v11  ;;  %v72_v29 = vld [vmem:[#allocation2] sm:$0xff]  ;;  %v116_v30 = vld [vmem:[#allocation7 + $0x10] sm:$0xff]  ;;  %v115_v31 = vld [vmem:[#allocation7 + $0x8] sm:$0xff] }
  0x19   :  { %98 = vmatpush.msra.mxu0 %v83_v8  ;;  %v114_v32 = vld [vmem:[#allocation7] sm:$0xff]  ;;  %v214_v33 = vld [vmem:[%s396_s2] ss:$0 sm:$0xff]  ;;  %s329_s2 = smov [#allocation8]  }
  0x1a   :  { %139 = vmatpush.msra.mxu1 %v124_v13  ;;  %v215_v37 = vld [vmem:[%s398_s4] ss:$0 sm:$0xff]  ;;  %s194_s4 = sshll.u32 %s329_s2, 4  ;;  %s195_s4 = int_to_ptr.vmem [resolvable:$true] %s194_s4 }
  0x1b   :  { %99 = vmatpush.msra.mxu0 %v82_v10  ;;  %v216_v40 = vld [vmem:[%s399_s5] ss:$0 sm:$0xff] }
  0x1c   :  { %140 = vmatpush.msra.mxu1 %v123_v15  ;;  %v217_v43 = vld [vmem:[%s400_s6] ss:$0 sm:$0xff] }
  0x1d   :  { %100 = vmatpush.msra.mxu0 %v81_v12 }
  0x1e   :  { %141 = vmatpush.msra.mxu1 %v122_v17 }
  0x1f   :  { %101 = vmatpush.msra.mxu0 %v80_v14 }
  0x20   :  { %142 = vmatpush.msra.mxu1 %v121_v19 }
  0x21   :  { %102 = vmatpush.msra.mxu0 %v79_v16 }
  0x22   :  { %143 = vmatpush.msra.mxu1 %v120_v21 }
  0x23   :  { %103 = vmatpush.msra.mxu0 %v78_v18 }
  0x24   :  { %144 = vmatpush.msra.mxu1 %v119_v23 }
  0x25   :  { %104 = vmatpush.msra.mxu0 %v77_v20 }
  0x26   :  { %145 = vmatpush.msra.mxu1 %v118_v25 }
  0x27   :  { %105 = vmatpush.msra.mxu0 %v76_v22 }
  0x28   :  { %146 = vmatpush.msra.mxu1 %v117_v27 }
  0x29   :  { %106 = vmatpush.msra.mxu0 %v75_v24 }
  0x2a   :  { %147 = vmatpush.msra.mxu1 %v116_v30 }
  0x2b   :  { %107 = vmatpush.msra.mxu0 %v74_v26 }
  0x2c   :  { %148 = vmatpush.msra.mxu1 %v115_v31 }
  0x2d   :  { %108 = vmatpush.msra.mxu0 %v73_v28 }
  0x2e   :  { %109 = vmatmul.f32.vlgmr.msra.gmra.mxu0 %v72_v29  ;;  %149 = vmatpush.msra.mxu1 %v114_v32 }
  0xab   :  { %v110_v34 = vpop.f32.mrf.mxu0 }
  0xac   :  { %v111_v35 = vadd.f32 %v214_v33, %v110_v34 }
  0xae   :  { %v113_v36 = vmax.f32 %v111_v35, 0.0 }
  0xb0   :  { %150 = vmatmul.f32.vlgmr.msra.gmra.mxu1 %v113_v36 }
 0x12d   :  { %v151_v38 = vpop.f32.mrf.mxu1 }
 0x12e   :  { %v152_v39 = vadd.f32 %v215_v37, %v151_v38 }
 0x130   :  { %v154_v41 = vmax.f32 %v152_v39, 0.0 }
 0x132   :  { %v159_v42 = vmul.f32 %v216_v40, %v154_v41 }
 0x134   :  { %160 = vadd.xlane.f32.xlu0 %v159_v42 }
 0x1a7   :  { %v161_v44 = vpop.xlane.xlu0 %160 }
 0x1a8   :  { %v166_v45 = vadd.f32 %v217_v43, %v161_v44 }
 0x1aa   :  { %v207_v46 = vmul.f32 -1.442695, %v166_v45 }
 0x1ac   :  { %218 = vpow2.f32 %v207_v46 }
 0x1b2   :  { %v219_v47 = vpop.eup %218 }
 0x1b3   :  { %v170_v48 = vadd.f32 1.0, %v219_v47 }
 0x1b5   :  { %220 = vrcp.f32 %v170_v48  ;;  %v182_v52 = vand.u32 2147483648, %v170_v48  ;;  %v180_v54 = vand.u32 2147483647, %v170_v48  ;;  %vm176_vm1 = vweird.f32 %v170_v48 }
 0x1b7   :  { %v183_v56 = vor.u32 1.1754944e-38, %v182_v52  ;;  %vm181_vm3 = vcmp.eq.f32.partialorder %v180_v54, 8.507059e+37 }
 0x1bb   :  { %v221_v49 = vpop.eup %220 }
 0x1bc   :  { %v172_v50 = vmul.f32 %v221_v49, %v170_v48  ;;  %vm177_vm0 = vweird.f32 %v221_v49 }
 0x1bd   :  { %vm178_vm2 = vmor %vm176_vm1, %vm177_vm0 }
 0x1be   :  { %v173_v51 = vsub.f32 1.0, %v172_v50 }
 0x1c0   :  { %v174_v53 = vmul.f32 %v221_v49, %v173_v51 }
 0x1c2   :  { %v175_v55 = vadd.f32 %v221_v49, %v174_v53 }
 0x1c4   :  { %v179_v57 = vsel %vm178_vm2, %v221_v49, %v175_v55 }
 0x1c5   :  { %v184_v58 = vsel %vm181_vm3, %v183_v56, %v179_v57 }
 0x1c6   :  { %v186_v59 = vmul.f32 4.0, %v184_v58 }
 0x1c8   :  { %v187_v60 = vadd.f32 -2.0, %v186_v59 }
 0x1ca   :  { %188 = vst [vmem:[#allocation8] sm:$0xff] %v187_v60 }
 0x1cb   :  { %199 = dma.vmem_to_hbm [thread:$0]  %s195_s4, 128, %s197_s23, [#allocation4]  }
 0x1cc   :  { %322 = dma.done.wait [#allocation4], 128  }
 0x1cd   :  { %323 = vsyncadd [#allocation4], 4294967168 }
 0x1ce   :  { %204 = vsyncpa [#allocation3], 1 }
 0x1cf   :  { %205 = vsyncpa [#allocation6], 1 }
 0x1d0   :  { %206 = vsyncpa [#allocation4], 1 }

</bundles_post_ra>
